<compile_context>
chip_gen: v5e
topology: v5e:2x2
jax: 0.10.0
libtpu: 0.0.40
codegen_flags: <defaults>
</compile_context>

<pallas_src>
import jax
import jax.numpy as jnp
from jax import lax
from jax.experimental import pallas as pl
from jax.experimental.pallas import tpu as pltpu

LANE = 128        # TPU lane width
TILE_E_MAX = 512  # edges per grid step for large E (multiple of 128)


def _fused_kernel(x_ref, w_ref, w2_ref, edges_ref,  # VMEM: (N,K), (K,Dp), (2,Dp), (2,TE)
                  out_ref,                           # VMEM block: (1, TE)
                  s_ref):                            # VMEM scratch: (n_pad, 2) per-node scores
    t = pl.program_id(0)
    n_pad = s_ref.shape[0]
    tile_e = out_ref.shape[1]

    # ---- encode + per-node partial scores, computed once (scratch persists
    #      across the "arbitrary" edge-tile grid axis).
    #      z = x @ W (identity activation; the adj matmul is dead code).
    #      s = z @ w2^T : s[:,0] = <z, w2_i_half>, s[:,1] = <z, w2_j_half>.
    @pl.when(t == 0)
    def _():
        z = jnp.dot(x_ref[...], w_ref[...], preferred_element_type=jnp.float32)
        s_ref[...] = lax.dot_general(
            z, w2_ref[...],
            dimension_numbers=(((1,), (1,)), ((), ())),   # contract over d_pad (w2 "transposed")
            preferred_element_type=jnp.float32)

    # ---- decode for this tile: vectorized scalar gather via iota-compare.
    # Edge endpoints for this tile as lane-dense int32 rows.
    idx_i = edges_ref[0:1, :]                                     # (1, tile_e)
    idx_j = edges_ref[1:2, :]                                     # (1, tile_e)
    node = lax.broadcasted_iota(jnp.int32, (n_pad, tile_e), 0)    # node id along sublanes

    s_i = s_ref[:, 0:1]                                           # (n_pad, 1)
    s_j = s_ref[:, 1:2]                                           # (n_pad, 1)

    # score[e] = s[idx_i[e], 0] + s[idx_j[e], 1]   (one-hot select + sublane reduce)
    score = jnp.sum(jnp.where(node == idx_i, s_i, 0.0)
                    + jnp.where(node == idx_j, s_j, 0.0),
                    axis=0, keepdims=True)                        # (1, tile_e)

    out_ref[...] = jax.nn.sigmoid(score).astype(out_ref.dtype)


def _round_up(v, m):
    return (v + m - 1) // m * m


@jax.jit
def slgae_concat_forward(x, weight, weight_two, train_edges, train_false_edges):
    n, in_dim = x.shape
    _, out_dim = weight.shape

    # ---- wrapper-side layout plumbing (padding only, no compute hoisted) ----
    n_pad = _round_up(n, 8)
    d_pad = _round_up(out_dim, LANE)

    x_p = jnp.pad(x.astype(jnp.float32), ((0, n_pad - n), (0, 0)))
    w_p = jnp.pad(weight.astype(jnp.float32), ((0, 0), (0, d_pad - out_dim)))
    # weight_two: (2*out_dim, 1) -> row 0 = "i" half, row 1 = "j" half, lane-padded with zeros.
    w2 = weight_two.astype(jnp.float32).reshape(2, out_dim)
    w2_p = jnp.pad(w2, ((0, 0), (0, d_pad - out_dim)))             # (2, d_pad)

    edges = jnp.concatenate([train_edges, train_false_edges], axis=0).astype(jnp.int32)
    e_total = edges.shape[0]
    # Small problems use one 128-wide tile; large E uses 512-wide tiles to
    # amortize per-grid-step overhead (stores stay full-lane-width either way).
    tile_e = min(TILE_E_MAX, _round_up(e_total, LANE))
    e_pad = _round_up(e_total, tile_e)
    edges_p = jnp.pad(edges, ((0, e_pad - e_total), (0, 0)))       # pad with (0, 0): valid, sliced off
    edges_t = edges_p.T                                            # (2, e_pad): row0 = i, row1 = j

    num_tiles = e_pad // tile_e

    out = pl.pallas_call(
        _fused_kernel,
        out_shape=jax.ShapeDtypeStruct((num_tiles, tile_e), jnp.float32),
        grid_spec=pltpu.PrefetchScalarGridSpec(
            num_scalar_prefetch=0,
            grid=(num_tiles,),
            in_specs=[
                pl.BlockSpec((n_pad, in_dim), lambda t: (0, 0)),   # x (invariant)
                pl.BlockSpec((in_dim, d_pad), lambda t: (0, 0)),   # weight (invariant)
                pl.BlockSpec((2, d_pad), lambda t: (0, 0)),        # weight_two rows (invariant)
                pl.BlockSpec((2, tile_e), lambda t: (0, t)),       # this tile's edge indices
            ],
            out_specs=pl.BlockSpec((1, tile_e), lambda t: (t, 0)),
            scratch_shapes=[
                pltpu.VMEM((n_pad, 2), jnp.float32),               # per-node partial scores
            ],
        ),
        compiler_params=pltpu.CompilerParams(
            # "arbitrary": per-node scores are computed once at t==0 and reused
            # by later edge tiles (scratch persists across grid iterations).
            dimension_semantics=("arbitrary",),
        ),
    )(x_p, w_p, w2_p, edges_t)

    # lane-dense (num_tiles, tile_e) slab -> (E_total, 1) column, matching PyTorch.
    return out.reshape(-1)[:e_total].reshape(e_total, 1)


def xavier_uniform(key, in_dim, out_dim):
    # matches torch.nn.init.xavier_uniform_ (gain=1): U(-a, a), a = sqrt(6/(fi+fo))
    a = (6.0 / (in_dim + out_dim)) ** 0.5
    return jax.random.uniform(key, (in_dim, out_dim), jnp.float32, -a, a)


if __name__ == "__main__":
    N, INPUT_DIM, OUTPUT_DIM = 64, 32, 16
    E_TRAIN, E_FALSE = 8, 8

    key = jax.random.PRNGKey(0)
    k_x, k_w1, k_w2, k_e1, k_e2 = jax.random.split(key, 5)

    x = jax.random.normal(k_x, (N, INPUT_DIM), jnp.float32)
    weight = xavier_uniform(k_w1, INPUT_DIM, OUTPUT_DIM)
    weight_two = xavier_uniform(k_w2, 2 * OUTPUT_DIM, 1)
    train_edges = jax.random.randint(k_e1, (E_TRAIN, 2), 0, N, jnp.int32)
    train_false_edges = jax.random.randint(k_e2, (E_FALSE, 2), 0, N, jnp.int32)
    # adj is not an input: `torch.mm(adj, x)` in encode() is dead code (overwritten
    # by the identity activation), so it never affects the forward output.

    out = slgae_concat_forward(x, weight, weight_two, train_edges, train_false_edges)
    out = jax.block_until_ready(out)

    # plain-JAX reference
    z = x @ weight
    edges = jnp.concatenate([train_edges, train_false_edges], axis=0)
    z_pair = jnp.concatenate([z[edges[:, 0]], z[edges[:, 1]]], axis=1)
    ref = jax.nn.sigmoid(z_pair @ weight_two)

    assert out.shape == (E_TRAIN + E_FALSE, 1)
    assert jnp.allclose(out, ref, atol=1e-4, rtol=1e-4), (out, ref)

    print("KERNEL_OK")
</pallas_src>

<mosaic_0001>
module attributes {stable_mosaic.version = 11 : i64} {
  func.func @_fused_kernel(%arg0: i32, %arg1: memref<64x32xf32, #tpu.memory_space<vmem>>, %arg2: memref<32x128xf32, #tpu.memory_space<vmem>>, %arg3: memref<2x128xf32, #tpu.memory_space<vmem>>, %arg4: memref<2x128xi32, #tpu.memory_space<vmem>>, %arg5: memref<1x128xf32, #tpu.memory_space<vmem>>, %arg6: memref<64x2xf32, #tpu.memory_space<vmem>>) attributes {dimension_semantics = [#tpu.dimension_semantics<arbitrary>], iteration_bounds = array<i64: 1>, scalar_prefetch = 0 : i64, scratch_operands = 1 : i64, tpu.core_type = #tpu.core_type<tc>, window_params = [{pipeline_mode = #tpu.pipeline_mode<synchronous>, transform_indices = @transform_0, window_bounds = array<i64: 64, 32>}, {pipeline_mode = #tpu.pipeline_mode<synchronous>, transform_indices = @transform_1, window_bounds = array<i64: 32, 128>}, {pipeline_mode = #tpu.pipeline_mode<synchronous>, transform_indices = @transform_2, window_bounds = array<i64: 2, 128>}, {transform_indices = @transform_3, window_bounds = array<i64: 2, 128>}, {transform_indices = @transform_4, window_bounds = array<i64: 1, 128>}]} {
    %c0_i32 = arith.constant 0 : i32
    %0 = arith.cmpi eq, %arg0, %c0_i32 : i32
    %1 = arith.extui %0 : i1 to i32
    %c0_i32_0 = arith.constant 0 : i32
    %2 = arith.cmpi ne, %1, %c0_i32_0 : i32
    scf.if %2 {
      %c0_12 = arith.constant 0 : index
      %c0_13 = arith.constant 0 : index
      %29 = vector.load %arg1[%c0_12, %c0_13] : memref<64x32xf32, #tpu.memory_space<vmem>>, vector<64x32xf32>
      %c0_14 = arith.constant 0 : index
      %c0_15 = arith.constant 0 : index
      %30 = vector.load %arg2[%c0_14, %c0_15] : memref<32x128xf32, #tpu.memory_space<vmem>>, vector<32x128xf32>
      %cst_16 = arith.constant dense<0.000000e+00> : vector<64x128xf32>
      %31 = tpu.matmul %29, %30, %cst_16 {dimension_numbers = #tpu.dot_dimension_numbers<[1], [0], [0], [1], [0, 0, 1, 1], [], []>} : vector<64x32xf32>, vector<32x128xf32>, vector<64x128xf32> -> vector<64x128xf32>
      %c0_17 = arith.constant 0 : index
      %c0_18 = arith.constant 0 : index
      %32 = vector.load %arg3[%c0_17, %c0_18] : memref<2x128xf32, #tpu.memory_space<vmem>>, vector<2x128xf32>
      %cst_19 = arith.constant dense<0.000000e+00> : vector<64x2xf32>
      %33 = tpu.matmul %31, %32, %cst_19 {dimension_numbers = #tpu.dot_dimension_numbers<[1], [1], [0], [0], [0, 0, 1, 0], [], []>} : vector<64x128xf32>, vector<2x128xf32>, vector<64x2xf32> -> vector<64x2xf32>
      %c0_20 = arith.constant 0 : index
      %c0_21 = arith.constant 0 : index
      %34 = vector.load %arg6[%c0_20, %c0_21] : memref<64x2xf32, #tpu.memory_space<vmem>>, vector<64x2xf32>
      tpu.vector_store %arg6[%c0_20, %c0_21], %33 {strides = array<i32>} : memref<64x2xf32, #tpu.memory_space<vmem>>, vector<64x2xf32>,
    } else {
    }
    %c0 = arith.constant 0 : index
    %c0_1 = arith.constant 0 : index
    %3 = vector.load %arg4[%c0, %c0_1] : memref<2x128xi32, #tpu.memory_space<vmem>>, vector<1x128xi32>
    %c1 = arith.constant 1 : index
    %c0_2 = arith.constant 0 : index
    %4 = vector.load %arg4[%c1, %c0_2] : memref<2x128xi32, #tpu.memory_space<vmem>>, vector<1x128xi32>
    %5 = tpu.iota {dimensions = array<i32: 0>} : vector<64x128xi32>
    %c0_3 = arith.constant 0 : index
    %c0_4 = arith.constant 0 : index
    %6 = vector.load %arg6[%c0_3, %c0_4] : memref<64x2xf32, #tpu.memory_space<vmem>>, vector<64x1xf32>
    %c0_5 = arith.constant 0 : index
    %c1_6 = arith.constant 1 : index
    %7 = vector.load %arg6[%c0_5, %c1_6] : memref<64x2xf32, #tpu.memory_space<vmem>>, vector<64x1xf32>
    %8 = vector.broadcast %3 : vector<1x128xi32> to vector<64x128xi32>
    %9 = arith.cmpi eq, %5, %8 : vector<64x128xi32>
    %cst = arith.constant 0.000000e+00 : f32
    %10 = vector.shape_cast %6 : vector<64x1xf32> to vector<64x1xf32>
    %11 = vector.broadcast %10 : vector<64x1xf32> to vector<64x128xf32>
    %12 = vector.broadcast %cst : f32 to vector<64x128xf32>
    %13 = arith.select %9, %11, %12 : vector<64x128xi1>, vector<64x128xf32>
    %14 = vector.broadcast %4 : vector<1x128xi32> to vector<64x128xi32>
    %15 = arith.cmpi eq, %5, %14 : vector<64x128xi32>
    %cst_7 = arith.constant 0.000000e+00 : f32
    %16 = vector.shape_cast %7 : vector<64x1xf32> to vector<64x1xf32>
    %17 = vector.broadcast %16 : vector<64x1xf32> to vector<64x128xf32>
    %18 = vector.broadcast %cst_7 : f32 to vector<64x128xf32>
    %19 = arith.select %15, %17, %18 : vector<64x128xi1>, vector<64x128xf32>
    %20 = arith.addf %13, %19 : vector<64x128xf32>
    %cst_8 = arith.constant dense<0.000000e+00> : vector<128xf32>
    %21 = vector.multi_reduction <add>, %20, %cst_8 [0] : vector<64x128xf32> to vector<128xf32>
    %22 = vector.shape_cast %21 : vector<128xf32> to vector<1x128xf32>
    %23 = arith.negf %22 : vector<1x128xf32>
    %24 = math.exp %23 : vector<1x128xf32>
    %cst_9 = arith.constant 1.000000e+00 : f32
    %25 = vector.broadcast %cst_9 : f32 to vector<1x128xf32>
    %26 = arith.addf %25, %24 : vector<1x128xf32>
    %27 = arith.divf %25, %26 : vector<1x128xf32>
    %c0_10 = arith.constant 0 : index
    %c0_11 = arith.constant 0 : index
    %28 = vector.load %arg5[%c0_10, %c0_11] : memref<1x128xf32, #tpu.memory_space<vmem>>, vector<1x128xf32>
    tpu.vector_store %arg5[%c0_10, %c0_11], %27 {strides = array<i32>} : memref<1x128xf32, #tpu.memory_space<vmem>>, vector<1x128xf32>,
    return
  }
  func.func @transform_0(%arg0: i32) -> (i32, i32) {
    %c0_i32 = arith.constant 0 : i32
    %c0_i32_0 = arith.constant 0 : i32
    %c0_i32_1 = arith.constant 0 : i32
    return %c0_i32, %c0_i32_0 : i32, i32
  }
  func.func @transform_1(%arg0: i32) -> (i32, i32) {
    %c0_i32 = arith.constant 0 : i32
    %c0_i32_0 = arith.constant 0 : i32
    %c0_i32_1 = arith.constant 0 : i32
    return %c0_i32, %c0_i32_0 : i32, i32
  }
  func.func @transform_2(%arg0: i32) -> (i32, i32) {
    %c0_i32 = arith.constant 0 : i32
    %c0_i32_0 = arith.constant 0 : i32
    %c0_i32_1 = arith.constant 0 : i32
    return %c0_i32, %c0_i32_0 : i32, i32
  }
  func.func @transform_3(%arg0: i32) -> (i32, i32) {
    %c0_i32 = arith.constant 0 : i32
    %c0_i32_0 = arith.constant 0 : i32
    return %c0_i32, %arg0 : i32, i32
  }
  func.func @transform_4(%arg0: i32) -> (i32, i32) {
    %c0_i32 = arith.constant 0 : i32
    %c0_i32_0 = arith.constant 0 : i32
    return %arg0, %c0_i32 : i32, i32
  }
}

</mosaic_0001>

<bundles_post_ra>
// kernel: slgae_concat_forward.1
= control target key start
LH: loop header
LB: loop body
LE: loop exit
PB: predicated region body
PF: predicated region fallthrough
CT: control target
= control target key end

     0   :  { %vm33_vm0 = vcmask 261120   ;;  %v355_v21 = vmov 1   ;;  %v356_v22 = vmov 0   ;;  %vm141_vm1 = vcmask 15360   ;;  %s446_s1 = inlined_call_operand.vmem [shape: f32[32,128], index: 1, kind: input, shape index: {}]   ;;  %s447_s2 = inlined_call_operand.vmem [shape: f32[2,128], index: 2, kind: input, shape index: {}]   ;;  %s448_s0 = inlined_call_operand.vmem [shape: f32[64,32], index: 0, kind: input, shape index: {}]   ;;  %s449_s3 = inlined_call_operand.vmem [shape: s32[2,128], index: 3, kind: input, shape index: {}]   ;;  %s450_s4 = inlined_call_operand.vmem [shape: f32[1,128], index: 4, kind: output, shape index: {}]  }
   0x1   :  { %v32_v0 = vld [vmem:[%s446_s1 + $0x18] sm:$0xff]  ;;  %v31_v1 = vld [vmem:[%s446_s1 + $0x10] sm:$0xff]  ;;  %v30_v2 = vld [vmem:[%s446_s1 + $0x8] sm:$0xff]  ;;  %337 = vset.pattern.permute.xlu1 %v355_v21  ;;  %336 = vset.pattern.permute.xlu0 %v356_v22  ;;  %v152_v44 = vlaneseq }
   0x2   :  { %70 = vmatpush.msra.mxu0 %v32_v0  ;;  %329 = vmatpush.msra.mxu2 %v32_v0  ;;  %v29_v3 = vld [vmem:[%s446_s1] sm:$0xff]  ;;  %v22_v7 = vld [vmem:[%s448_s0 + $0x8] sm:$0xff]  ;;  %v23_v9 = vld [vmem:[%s448_s0 + $0x10] sm:$0xff] }
   0x3   :  { %v99_v4 = vld [vmem:[%s447_s2] sm:$0x3]  ;;  %v26_v8 = vld [vmem:[%s448_s0 + $0x28] sm:$0xff]  ;;  %v27_v10 = vld [vmem:[%s448_s0 + $0x30] sm:$0xff]  ;;  %338 = vset.pattern.permute.xlu2 %v356_v22  ;;  %v153_v46 = vshrl.u32 %v152_v44, 7 }
   0x4   :  { %71 = vmatpush.msra.mxu0 %v31_v1  ;;  %330 = vmatpush.msra.mxu2 %v31_v1  ;;  %v21_v5 = vld [vmem:[%s448_s0] sm:$0xff]  ;;  %v24_v11 = vld [vmem:[%s448_s0 + $0x18] sm:$0xff] }
   0x5   :  { %v25_v6 = vld [vmem:[%s448_s0 + $0x20] sm:$0xff]  ;;  %115 = vmatpush.xpose.msra.mxu1 %v99_v4  ;;  %333 = vmatpush.xpose.msra.mxu3 %v99_v4  ;;  %v28_v12 = vld [vmem:[%s448_s0 + $0x38] sm:$0xff]  ;;  %v154_v47 = vadd.s32 8, %v153_v46  ;;  %v155_v55 = vadd.s32 16, %v153_v46  ;;  %v156_v56 = vadd.s32 24, %v153_v46  ;;  %v157_v60 = vadd.s32 32, %v153_v46 }
   0x6   :  { %72 = vmatpush.msra.mxu0 %v30_v2  ;;  %331 = vmatpush.msra.mxu2 %v30_v2  ;;  %v349_v49 = vld [vmem:[%s449_s3] ss:$0 sm:$0xff]  ;;  %v350_v50 = vld [vmem:[%s449_s3 + $0x1] ss:$0 sm:$0xff] }
   0x7   :  { %vm228_vm2 = vcmp.eq.s32.totalorder %v154_v47, %v350_v50  ;;  %vm171_vm3 = vcmp.eq.s32.totalorder %v154_v47, %v349_v49  ;;  %vm227_vm4 = vcmp.eq.s32.totalorder %v153_v46, %v350_v50  ;;  %vm170_vm5 = vcmp.eq.s32.totalorder %v153_v46, %v349_v49 }
   0x8   :  { %73 = vmatpush.msra.mxu0 %v29_v3  ;;  %332 = vmatpush.msra.mxu2 %v29_v3  ;;  %vm229_vm6 = vcmp.eq.s32.totalorder %v155_v55, %v350_v50  ;;  %vm230_vm7 = vcmp.eq.s32.totalorder %v156_v56, %v350_v50  ;;  %vm172_vm8 = vcmp.eq.s32.totalorder %v155_v55, %v349_v49 }
   0x9   :  { %320 = vmatmul.msk.f32.vlgmr.msra.gmra.mxu0 %vm33_vm0, %v21_v5  ;;  %324 = vmatmul.msk.f32.vlgmr.msra.gmra.mxu2 %vm33_vm0, %v25_v6  ;;  %vm173_vm9 = vcmp.eq.s32.totalorder %v156_v56, %v349_v49  ;;  %vm231_vm10 = vcmp.eq.s32.totalorder %v157_v60, %v350_v50  ;;  %vm174_vm11 = vcmp.eq.s32.totalorder %v157_v60, %v349_v49 }
  0x11   :  { %321 = vmatmul.msk.f32.gmra.mxu0 %vm33_vm0, %v22_v7  ;;  %325 = vmatmul.msk.f32.gmra.mxu2 %vm33_vm0, %v26_v8  ;;  %v158_v8 = vadd.s32 40, %v153_v46 }
  0x13   :  { %vm175_vm12 = vcmp.eq.s32.totalorder %v158_v8, %v349_v49  ;;  %vm232_vm13 = vcmp.eq.s32.totalorder %v158_v8, %v350_v50 }
  0x19   :  { %322 = vmatmul.msk.f32.gmra.mxu0 %vm33_vm0, %v23_v9  ;;  %326 = vmatmul.msk.f32.gmra.mxu2 %vm33_vm0, %v27_v10 }
  0x21   :  { %323 = vmatmul.msk.f32.gmra.mxu0 %vm33_vm0, %v24_v11  ;;  %327 = vmatmul.msk.f32.gmra.mxu2 %vm33_vm0, %v28_v12  ;;  %v159_v11 = vadd.s32 48, %v153_v46 }
  0x23   :  { %vm176_vm14 = vcmp.eq.s32.totalorder %v159_v11, %v349_v49  ;;  %vm233_vm15 = vcmp.eq.s32.totalorder %v159_v11, %v350_v50 }
  0x86   :  { %v75_v13 = vpop.f32.mrf.mxu0 }
  0x87   :  { %116 = vmatmul.f32.vlgmr.msra.gmra.mxu1 %v75_v13 }
  0x8c   :  { %v87_v14 = vpop.f32.mrf.mxu2 }
  0x8e   :  { %v78_v15 = vpop.f32.mrf.mxu0 }
  0x8f   :  { %119 = vmatmul.f32.gmra.mxu1 %v78_v15 }
  0x94   :  { %v90_v16 = vpop.f32.mrf.mxu2 }
  0x95   :  { %131 = vmatmul.f32.vlgmr.msra.gmra.mxu3 %v90_v16  ;;  %v160_v16 = vadd.s32 56, %v153_v46 }
  0x96   :  { %v81_v17 = vpop.f32.mrf.mxu0 }
  0x97   :  { %122 = vmatmul.f32.gmra.mxu1 %v81_v17  ;;  %vm177_vm0 = vcmp.eq.s32.totalorder %v160_v16, %v349_v49 }
  0x9c   :  { %v93_v18 = vpop.f32.mrf.mxu2 }
  0x9d   :  { %134 = vmatmul.f32.gmra.mxu3 %v93_v18 }
  0x9e   :  { %v84_v19 = vpop.f32.mrf.mxu0 }
  0x9f   :  { %125 = vmatmul.f32.gmra.mxu1 %v84_v19 }
  0xa4   :  { %v96_v20 = vpop.f32.mrf.mxu2 }
  0xa5   :  { %137 = vmatmul.f32.gmra.mxu3 %v96_v20 }
  0xa7   :  { %128 = vmatmul.f32.gmra.mxu1 %v87_v14 }
 0x104   :  { %v117_v23 = vpop.f32.mrf.mxu1 }
 0x105   :  { %142 = vst.msk [vmem:[#allocation2] sm:$0xff] %vm141_vm1, %v117_v23 }
 0x10c   :  { %v120_v24 = vpop.f32.mrf.mxu1  ;;  %v161_v25 = vld [vmem:[#allocation2] sm:$0xff] }
 0x10d   :  { %143 = vst.msk [vmem:[#allocation2 + $0x8] sm:$0xff] %vm141_vm1, %v120_v24  ;;  %236 = vperm.xlu1 %337, %v161_v25   ;;  %180 = vperm.xlu0 %336, %v161_v25  }
 0x114   :  { %v123_v26 = vpop.f32.mrf.mxu1  ;;  %v162_v27 = vld [vmem:[#allocation2 + $0x8] sm:$0xff] }
 0x115   :  { %144 = vst.msk [vmem:[#allocation2 + $0x10] sm:$0xff] %vm141_vm1, %v123_v26  ;;  %240 = vperm.xlu1 %337, %v162_v27   ;;  %185 = vperm.xlu0 %336, %v162_v27  }
 0x118   :  { %v132_v28 = vpop.f32.mrf.mxu3 }
 0x119   :  { %147 = vst.msk [vmem:[#allocation2 + $0x28] sm:$0xff] %vm141_vm1, %v132_v28 }
 0x11c   :  { %v126_v29 = vpop.f32.mrf.mxu1  ;;  %v163_v30 = vld [vmem:[#allocation2 + $0x10] sm:$0xff] }
 0x11d   :  { %145 = vst.msk [vmem:[#allocation2 + $0x18] sm:$0xff] %vm141_vm1, %v126_v29  ;;  %190 = vperm.xlu2 %338, %v163_v30   ;;  %340 = vset.pattern.permute.xlu1 %v356_v22 }
 0x120   :  { %v166_v31 = vld [vmem:[#allocation2 + $0x28] sm:$0xff]  ;;  %v135_v32 = vpop.f32.mrf.mxu3 }
 0x121   :  { %205 = vperm.xlu1 %340, %v166_v31   ;;  %148 = vst.msk [vmem:[#allocation2 + $0x30] sm:$0xff] %vm141_vm1, %v135_v32 }
 0x124   :  { %v129_v33 = vpop.f32.mrf.mxu1  ;;  %v164_v34 = vld [vmem:[#allocation2 + $0x18] sm:$0xff] }
 0x125   :  { %146 = vst.msk [vmem:[#allocation2 + $0x20] sm:$0xff] %vm141_vm1, %v129_v33  ;;  %339 = vset.pattern.permute.xlu2 %v355_v21  ;;  %195 = vperm.xlu0 %336, %v164_v34  }
 0x126   :  { %244 = vperm.xlu2 %339, %v163_v30  }
 0x128   :  { %v138_v35 = vpop.f32.mrf.mxu3  ;;  %v167_v37 = vld [vmem:[#allocation2 + $0x30] sm:$0xff] }
 0x129   :  { %341 = vset.pattern.permute.xlu1 %v355_v21  ;;  %149 = vst.msk [vmem:[#allocation2 + $0x38] sm:$0xff] %vm141_vm1, %v138_v35  ;;  %vm234_vm1 = vcmp.eq.s32.totalorder %v160_v16, %v350_v50 }
 0x12a   :  { %248 = vperm.xlu1 %341, %v164_v34  }
 0x12c   :  { %v165_v36 = vld [vmem:[#allocation2 + $0x20] sm:$0xff] }
 0x12d   :  { %344 = vset.pattern.permute.xlu0 %v355_v21 }
 0x12e   :  { %256 = vperm.xlu2 %339, %v166_v31   ;;  %252 = vperm.xlu0 %344, %v165_v36  }
 0x130   :  { %v168_v38 = vld [vmem:[#allocation2 + $0x38] sm:$0xff] }
 0x132   :  { %342 = vset.pattern.permute.xlu1 %v356_v22 }
 0x133   :  { %210 = vperm.xlu1 %342, %v167_v37  }
 0x136   :  { %343 = vset.pattern.permute.xlu2 %v356_v22  ;;  %346 = vset.pattern.permute.xlu0 %v356_v22 }
 0x137   :  { %200 = vperm.xlu2 %343, %v165_v36   ;;  %215 = vperm.xlu0 %346, %v168_v38  }
 0x13b   :  { %347 = vset.pattern.permute.xlu1 %v355_v21 }
 0x13c   :  { %264 = vperm.xlu1 %347, %v168_v38  }
 0x13f   :  { %345 = vset.pattern.permute.xlu2 %v355_v21  ;;  %348 = vset.pattern.permute.xlu0 %v355_v21 }
 0x140   :  { %260 = vperm.xlu2 %345, %v167_v37  }
 0x177   :  { %v191_v39 = vpop.permute.xlu2 %190 }
 0x178   :  { %v220_v4 = vsel %vm172_vm8, %v191_v39, 0.0 }
 0x17f   :  { %v237_v40 = vpop.permute.xlu1 %236  ;;  %v181_v41 = vpop.permute.xlu0 %180 }
 0x180   :  { %v245_v42 = vpop.permute.xlu2 %244  ;;  %v267_v57 = vsel %vm227_vm4, %v237_v40, 0.0  ;;  %v218_v58 = vsel %vm170_vm5, %v181_v41, 0.0 }
 0x181   :  { %v275_v62 = vadd.f32 %v267_v57, %v218_v58  ;;  %v269_v0 = vsel %vm229_vm6, %v245_v42, 0.0 }
 0x182   :  { %v277_v7 = vadd.f32 %v269_v0, %v220_v4 }
 0x187   :  { %v241_v43 = vpop.permute.xlu1 %240  ;;  %v186_v45 = vpop.permute.xlu0 %185 }
 0x188   :  { %v257_v51 = vpop.permute.xlu2 %256  ;;  %v268_v53 = vsel %vm228_vm2, %v241_v43, 0.0  ;;  %v219_v54 = vsel %vm171_vm3, %v186_v45, 0.0 }
 0x189   :  { %v276_v59 = vadd.f32 %v268_v53, %v219_v54  ;;  %v272_v20 = vsel %vm232_vm13, %v257_v51, 0.0 }
 0x18b   :  { %v283_v2 = vadd.f32 %v276_v59, %v275_v62 }
 0x18d   :  { %v284_v12 = vadd.f32 %v283_v2, %v277_v7 }
 0x191   :  { %v201_v63 = vpop.permute.xlu2 %200 }
 0x192   :  { %v222_v10 = vsel %vm174_vm11, %v201_v63, 0.0 }
 0x193   :  { %v206_v48 = vpop.permute.xlu1 %205 }
 0x194   :  { %v223_v17 = vsel %vm175_vm12, %v206_v48, 0.0 }
 0x195   :  { %v280_v22 = vadd.f32 %v272_v20, %v223_v17 }
 0x197   :  { %v196_v52 = vpop.permute.xlu0 %195 }
 0x198   :  { %v221_v5 = vsel %vm173_vm9, %v196_v52, 0.0 }
 0x19a   :  { %v261_v18 = vpop.permute.xlu2 %260 }
 0x19b   :  { %v273_v24 = vsel %vm233_vm15, %v261_v18, 0.0 }
 0x19c   :  { %v249_v61 = vpop.permute.xlu1 %248 }
 0x19d   :  { %v270_v1 = vsel %vm230_vm7, %v249_v61, 0.0 }
 0x19e   :  { %v278_v9 = vadd.f32 %v270_v1, %v221_v5 }
 0x1a0   :  { %v253_v3 = vpop.permute.xlu0 %252  ;;  %v285_v15 = vadd.f32 %v284_v12, %v278_v9 }
 0x1a1   :  { %v271_v6 = vsel %vm231_vm10, %v253_v3, 0.0 }
 0x1a2   :  { %v279_v13 = vadd.f32 %v271_v6, %v222_v10 }
 0x1a4   :  { %v286_v19 = vadd.f32 %v285_v15, %v279_v13 }
 0x1a5   :  { %v211_v14 = vpop.permute.xlu1 %210 }
 0x1a6   :  { %v224_v21 = vsel %vm176_vm14, %v211_v14, 0.0  ;;  %v287_v26 = vadd.f32 %v286_v19, %v280_v22 }
 0x1a7   :  { %v281_v25 = vadd.f32 %v273_v24, %v224_v21 }
 0x1a9   :  { %v216_v23 = vpop.permute.xlu0 %215  ;;  %v288_v30 = vadd.f32 %v287_v26, %v281_v25 }
 0x1aa   :  { %v225_v27 = vsel %vm177_vm0, %v216_v23, 0.0 }
 0x1ae   :  { %v265_v28 = vpop.permute.xlu1 %264 }
 0x1af   :  { %v274_v29 = vsel %vm234_vm1, %v265_v28, 0.0 }
 0x1b0   :  { %v282_v31 = vadd.f32 %v274_v29, %v225_v27 }
 0x1b2   :  { %v289_v32 = vadd.f32 %v288_v30, %v282_v31 }
 0x1b4   :  { %v290_v33 = vrot.slane %v289_v32, 4 }
 0x1b6   :  { %v291_v34 = vadd.f32 %v290_v33, %v289_v32 }
 0x1b8   :  { %v292_v35 = vrot.slane %v291_v34, 2 }
 0x1ba   :  { %v293_v36 = vadd.f32 %v292_v35, %v291_v34 }
 0x1bc   :  { %v294_v37 = vrot.slane %v293_v36, 1 }
 0x1be   :  { %v295_v38 = vadd.f32 %v294_v37, %v293_v36 }
 0x1c0   :  { %v328_v39 = vmul.f32 -1.442695, %v295_v38 }
 0x1c2   :  { %351 = vpow2.f32 %v328_v39 }
 0x1c8   :  { %v352_v40 = vpop.eup %351 }
 0x1c9   :  { %v299_v41 = vadd.f32 1.0, %v352_v40 }
 0x1cb   :  { %353 = vrcp.f32 %v299_v41  ;;  %v311_v45 = vand.u32 2147483648, %v299_v41  ;;  %v309_v47 = vand.u32 2147483647, %v299_v41  ;;  %vm305_vm3 = vweird.f32 %v299_v41 }
 0x1cd   :  { %v312_v49 = vor.u32 1.1754944e-38, %v311_v45  ;;  %vm310_vm5 = vcmp.eq.f32.partialorder %v309_v47, 8.507059e+37 }
 0x1d1   :  { %v354_v42 = vpop.eup %353 }
 0x1d2   :  { %v301_v43 = vmul.f32 %v354_v42, %v299_v41  ;;  %vm306_vm2 = vweird.f32 %v354_v42 }
 0x1d3   :  { %vm307_vm4 = vmor %vm305_vm3, %vm306_vm2 }
 0x1d4   :  { %v302_v44 = vsub.f32 1.0, %v301_v43 }
 0x1d6   :  { %v303_v46 = vmul.f32 %v354_v42, %v302_v44 }
 0x1d8   :  { %v304_v48 = vadd.f32 %v354_v42, %v303_v46 }
 0x1da   :  { %v308_v50 = vsel %vm307_vm4, %v354_v42, %v304_v48 }
 0x1db   :  { %v313_v51 = vsel %vm310_vm5, %v312_v49, %v308_v50 }
 0x1dc   :  { %315 = vst [vmem:[%s450_s4] sm:$0x1] %v313_v51 }

</bundles_post_ra>
